<compile_context>
chip_gen: v5e
topology: v5e:2x2
jax: 0.10.0
libtpu: 0.0.40
codegen_flags: <defaults>
</compile_context>

<pallas_src>
import jax
import jax.numpy as jnp
import numpy as np
from jax.experimental import pallas as pl
from jax.experimental.pallas import tpu as pltpu

# ---- "constants" module stand-ins (small synthetic sizes) ----
VOCAB_SIZE = 100
EMBED_DIM = 32
HIDDEN_DIM = 32
BATCH_SIZE = 2
SEQ_LEN = 8

VOCAB_PAD = 128          # vocab padded to a lane-friendly width for the one-hot gather


def lstm_mean_kernel(ids_ref, emb_ref, wih_ref, whh_ref, b_ref, h0_ref, c0_ref,
                     out_ref):
    """Embedding gather + whole LSTM + mean-over-time in one invocation.

    ids_ref : (T*Bp, 1) int32 time-major word ids (t-major rows of Bp)
    emb_ref : (Vp, E)   bf16 vocab-padded embedding table (VMEM resident)
    wih_ref : (E, 4H)   bf16 input->gates weights, gate order [i, f, g, o]
    whh_ref : (H, 4H)   bf16 hidden->gates weights
    b_ref   : (1, 4H)   f32 combined bias (b_ih + b_hh)
    h0/c0   : (Bp, H)   f32 initial hidden / cell state
    out_ref : (Bp, H)   f32 mean over time of hidden states
    """
    Bp, H = h0_ref.shape
    TBp = ids_ref.shape[0]
    T = TBp // Bp
    Vp = emb_ref.shape[0]

    # ---- In-kernel embedding gather as a one-hot MXU matmul (off the critical
    # path; avoids relying on dynamic sublane-gather lowering). ----
    ids = ids_ref[...]                                               # (TBp, 1)
    vocab_lane = jax.lax.broadcasted_iota(jnp.int32, (TBp, Vp), 1)
    one_hot = (vocab_lane == ids).astype(emb_ref.dtype)              # (TBp, Vp) bf16
    x = jnp.dot(one_hot, emb_ref[...],
                preferred_element_type=jnp.float32)                  # (TBp, E) f32
    # TODO(synk): at real GloVe sizes (400K x 300) keep the table in HBM
    # (memory_space=pl.ANY) and row-gather per time chunk with make_async_copy.

    # ---- Hoisted input projection + bias for ALL time steps: one MXU matmul,
    # bias broadcast happens exactly once. Lives in vregs (8 vregs), no scratch.
    gx = (jnp.dot(x.astype(wih_ref.dtype), wih_ref[...],
                  preferred_element_type=jnp.float32)
          + b_ref[...])                                              # (TBp, 4H) f32

    whh = whh_ref[...]                                               # (H, 4H) bf16
    # TODO(synk): make whh MXU weight-stationary (pltpu.matmul_push_rhs once,
    # matmul_acc_lhs/matmul_pop per step) to drop the per-step weight reload
    # from the serial recurrence path.

    # Hoisted lane mask: pre-scale the `g` gate lanes by 2 so ONE sigmoid pass
    # also yields tanh(g) via tanh(x) = 2*sigmoid(2x) - 1.
    lane = jax.lax.broadcasted_iota(jnp.int32, (Bp, 4 * H), 1)
    g_scale = jnp.where((lane >= 2 * H) & (lane < 3 * H), 2.0, 1.0
                        ).astype(jnp.float32)

    h = h0_ref[...]
    c = c0_ref[...]
    acc = jnp.zeros_like(h)

    # T=8: fully unrolled at trace time so gx slices are static vreg selects.
    # TODO(synk): at real caption lengths switch to lax.fori_loop with partial
    # unroll (e.g. 4-8) and stream gx through a chunked VMEM scratch so code
    # size / VMEM stay bounded (v7x has 64 MiB physical VMEM).
    for t in range(T):
        g_x = gx[t * Bp:(t + 1) * Bp, :]                             # (Bp, 4H)
        gates = g_x + jnp.dot(h.astype(whh.dtype), whh,
                              preferred_element_type=jnp.float32)
        # Single full-width EUP pass per step (plus quarter-width tanh below).
        # TODO(synk): on v6e/v7x run this sigmoid in bf16 (~2x EUP throughput);
        # kept f32 so the identical kernel stays optimal/correct on v5e.
        sg = jax.nn.sigmoid(gates * g_scale)                         # (Bp, 4H)
        i_g = sg[:, 0 * H:1 * H]
        f_g = sg[:, 1 * H:2 * H]
        g_g = 2.0 * sg[:, 2 * H:3 * H] - 1.0                         # tanh identity
        o_g = sg[:, 3 * H:4 * H]
        c = f_g * c + i_g * g_g
        h = o_g * jnp.tanh(c)
        acc = acc + h

    out_ref[...] = (acc * (1.0 / T)).astype(out_ref.dtype)


def lstm_mean_pallas(ids_tm, emb_p, w_ih, w_hh, bias, h0, c0):
    """ids_tm: (T*Bp, 1) int32 time-major ids. Returns (Bp, H) f32 mean hidden."""
    Bp, H = h0.shape
    vmem = pl.BlockSpec(memory_space=pltpu.MemorySpace.VMEM)
    return pl.pallas_call(
        lstm_mean_kernel,
        out_shape=jax.ShapeDtypeStruct((Bp, H), jnp.float32),
        in_specs=[vmem] * 7,
        out_specs=vmem,
    )(ids_tm, emb_p, w_ih, w_hh, bias, h0, c0)
    # TODO(synk): for large batches on v7x, add a batch-block grid axis with
    # dimension_semantics=("parallel",) to use the second TensorCore.


def lstm_model_forward(batch_input_ids, params):
    """Full LSTM_Model.forward: embedding lookup -> LSTM -> mean(dim=1, keepdims).

    batch_input_ids: (B, T) int32 word indices.
    Returns: (B, 1, H) f32 (matches torch.mean(lstm_out, dim=1, keepdims=True)).
    """
    B, T = batch_input_ids.shape
    h0, c0 = params["h0"], params["c0"]
    Bp = ((B + 7) // 8) * 8          # pad batch to the f32 sublane count
    pad = Bp - B

    # Only tiny integer / weight prep remains outside the kernel (few KB total);
    # the float embedding gather + projection are fused in-kernel.
    ids_p = jnp.pad(batch_input_ids, ((0, pad), (0, 0)))             # (Bp, T)
    ids_tm = ids_p.T.reshape(T * Bp, 1).astype(jnp.int32)            # time-major

    emb_p = jnp.pad(params["embedding"],
                    ((0, VOCAB_PAD - VOCAB_SIZE), (0, 0))).astype(jnp.bfloat16)

    out_bh = lstm_mean_pallas(
        ids_tm,
        emb_p,
        params["w_ih"].astype(jnp.bfloat16),
        params["w_hh"].astype(jnp.bfloat16),
        params["bias"],
        jnp.pad(h0, ((0, pad), (0, 0))),
        jnp.pad(c0, ((0, pad), (0, 0))),
    )
    return out_bh[:B, None, :]  # (B, 1, H)


def init_params(key):
    """Deterministic synthetic parameters (shapes from the module __init__)."""
    k_emb, k_wih, k_whh, k_bih, k_bhh, k_h0, k_c0 = jax.random.split(key, 7)
    # TODO(synk): real model loads a frozen GloVe table; synthetic table used here.
    embedding = jax.random.normal(k_emb, (VOCAB_SIZE, EMBED_DIM), jnp.float32) * 0.1
    # PyTorch nn.LSTM stores weight_ih_l0 as (4H, E); kept transposed (E, 4H)
    # for MXU-friendly x @ W. Gate order i, f, g, o.
    w_ih = jax.random.normal(k_wih, (EMBED_DIM, 4 * HIDDEN_DIM), jnp.float32) * 0.1
    w_hh = jax.random.normal(k_whh, (HIDDEN_DIM, 4 * HIDDEN_DIM), jnp.float32) * 0.1
    b_ih = jax.random.normal(k_bih, (4 * HIDDEN_DIM,), jnp.float32) * 0.1
    b_hh = jax.random.normal(k_bhh, (4 * HIDDEN_DIM,), jnp.float32) * 0.1
    bias = (b_ih + b_hh).reshape(1, 4 * HIDDEN_DIM)
    h0 = jax.random.uniform(k_h0, (BATCH_SIZE, HIDDEN_DIM), jnp.float32, -0.1, 0.1)
    c0 = jax.random.uniform(k_c0, (BATCH_SIZE, HIDDEN_DIM), jnp.float32, -0.1, 0.1)
    return {"embedding": embedding, "w_ih": w_ih, "w_hh": w_hh, "bias": bias,
            "h0": h0, "c0": c0}


def lstm_model_reference(batch_input_ids, params):
    """Pure-JAX f32 reference of the same forward pass (for correctness check)."""
    emb = jnp.take(params["embedding"], batch_input_ids, axis=0)  # (B, T, E)
    h, c = params["h0"], params["c0"]
    H = h.shape[-1]
    hs = []
    for t in range(batch_input_ids.shape[1]):
        gates = (emb[:, t, :] @ params["w_ih"] + h @ params["w_hh"]
                 + params["bias"])
        i_g = jax.nn.sigmoid(gates[:, 0 * H:1 * H])
        f_g = jax.nn.sigmoid(gates[:, 1 * H:2 * H])
        g_g = jnp.tanh(gates[:, 2 * H:3 * H])
        o_g = jax.nn.sigmoid(gates[:, 3 * H:4 * H])
        c = f_g * c + i_g * g_g
        h = o_g * jnp.tanh(c)
        hs.append(h)
    return jnp.mean(jnp.stack(hs, axis=1), axis=1, keepdims=True)


if __name__ == "__main__":
    key = jax.random.PRNGKey(0)
    k_params, k_ids = jax.random.split(key)
    params = init_params(k_params)

    # Batch of padded captions: (B, T) integer glove indices.
    ids = jax.random.randint(k_ids, (BATCH_SIZE, SEQ_LEN), 0, VOCAB_SIZE,
                             dtype=jnp.int32)

    fwd = jax.jit(lstm_model_forward)
    out = jax.block_until_ready(fwd(ids, params))

    assert out.shape == (BATCH_SIZE, 1, HIDDEN_DIM), out.shape
    assert np.isfinite(np.asarray(out)).all()

    ref = np.asarray(lstm_model_reference(ids, params))
    np.testing.assert_allclose(np.asarray(out), ref, rtol=5e-2, atol=5e-2)

    print("KERNEL_OK")
</pallas_src>

<mosaic_0001>
module attributes {stable_mosaic.version = 11 : i64} {
  func.func @lstm_mean_kernel(%arg0: memref<64x1xi32, #tpu.memory_space<vmem>>, %arg1: memref<128x32xbf16, #tpu.memory_space<vmem>>, %arg2: memref<32x128xbf16, #tpu.memory_space<vmem>>, %arg3: memref<32x128xbf16, #tpu.memory_space<vmem>>, %arg4: memref<1x128xf32, #tpu.memory_space<vmem>>, %arg5: memref<8x32xf32, #tpu.memory_space<vmem>>, %arg6: memref<8x32xf32, #tpu.memory_space<vmem>>, %arg7: memref<8x32xf32, #tpu.memory_space<vmem>>) attributes {dimension_semantics = [], scalar_prefetch = 0 : i64, scratch_operands = 0 : i64, tpu.core_type = #tpu.core_type<tc>} {
    %c0 = arith.constant 0 : index
    %c0_0 = arith.constant 0 : index
    %0 = vector.load %arg0[%c0, %c0_0] : memref<64x1xi32, #tpu.memory_space<vmem>>, vector<64x1xi32>
    %1 = tpu.iota {dimensions = array<i32: 1>} : vector<64x128xi32>
    %2 = vector.broadcast %0 : vector<64x1xi32> to vector<64x128xi32>
    %3 = arith.cmpi eq, %1, %2 : vector<64x128xi32>
    %4 = arith.extui %3 : vector<64x128xi1> to vector<64x128xi32>
    %5 = arith.sitofp %4 : vector<64x128xi32> to vector<64x128xf32>
    %6 = arith.truncf %5 : vector<64x128xf32> to vector<64x128xbf16>
    %c0_1 = arith.constant 0 : index
    %c0_2 = arith.constant 0 : index
    %7 = vector.load %arg1[%c0_1, %c0_2] : memref<128x32xbf16, #tpu.memory_space<vmem>>, vector<128x32xbf16>
    %cst = arith.constant dense<0.000000e+00> : vector<64x32xf32>
    %8 = tpu.matmul %6, %7, %cst {dimension_numbers = #tpu.dot_dimension_numbers<[1], [0], [0], [1], [0, 0, 1, 1], [], []>} : vector<64x128xbf16>, vector<128x32xbf16>, vector<64x32xf32> -> vector<64x32xf32>
    %9 = arith.truncf %8 : vector<64x32xf32> to vector<64x32xbf16>
    %c0_3 = arith.constant 0 : index
    %c0_4 = arith.constant 0 : index
    %10 = vector.load %arg2[%c0_3, %c0_4] : memref<32x128xbf16, #tpu.memory_space<vmem>>, vector<32x128xbf16>
    %cst_5 = arith.constant dense<0.000000e+00> : vector<64x128xf32>
    %11 = tpu.matmul %9, %10, %cst_5 {dimension_numbers = #tpu.dot_dimension_numbers<[1], [0], [0], [1], [0, 0, 1, 1], [], []>} : vector<64x32xbf16>, vector<32x128xbf16>, vector<64x128xf32> -> vector<64x128xf32>
    %c0_6 = arith.constant 0 : index
    %c0_7 = arith.constant 0 : index
    %12 = vector.load %arg4[%c0_6, %c0_7] : memref<1x128xf32, #tpu.memory_space<vmem>>, vector<1x128xf32>
    %13 = vector.broadcast %12 : vector<1x128xf32> to vector<64x128xf32>
    %14 = arith.addf %11, %13 : vector<64x128xf32>
    %c0_8 = arith.constant 0 : index
    %c0_9 = arith.constant 0 : index
    %15 = vector.load %arg3[%c0_8, %c0_9] : memref<32x128xbf16, #tpu.memory_space<vmem>>, vector<32x128xbf16>
    %16 = tpu.iota {dimensions = array<i32: 1>} : vector<8x128xi32>
    %c64_i32 = arith.constant 64 : i32
    %17 = vector.broadcast %c64_i32 : i32 to vector<8x128xi32>
    %18 = arith.cmpi sge, %16, %17 : vector<8x128xi32>
    %c96_i32 = arith.constant 96 : i32
    %19 = vector.broadcast %c96_i32 : i32 to vector<8x128xi32>
    %20 = arith.cmpi slt, %16, %19 : vector<8x128xi32>
    %21 = arith.andi %18, %20 : vector<8x128xi1>
    %cst_10 = arith.constant 2.000000e+00 : f32
    %cst_11 = arith.constant 1.000000e+00 : f32
    %22 = vector.broadcast %cst_10 : f32 to vector<8x128xf32>
    %23 = vector.broadcast %cst_11 : f32 to vector<8x128xf32>
    %24 = arith.select %21, %22, %23 : vector<8x128xi1>, vector<8x128xf32>
    %c0_12 = arith.constant 0 : index
    %c0_13 = arith.constant 0 : index
    %25 = vector.load %arg5[%c0_12, %c0_13] : memref<8x32xf32, #tpu.memory_space<vmem>>, vector<8x32xf32>
    %c0_14 = arith.constant 0 : index
    %c0_15 = arith.constant 0 : index
    %26 = vector.load %arg6[%c0_14, %c0_15] : memref<8x32xf32, #tpu.memory_space<vmem>>, vector<8x32xf32>
    %cst_16 = arith.constant 0.000000e+00 : f32
    %27 = vector.broadcast %cst_16 : f32 to vector<8x32xf32>
    %28 = vector.extract_strided_slice %14 {offsets = [0, 0], sizes = [8, 128], strides = [1, 1]} : vector<64x128xf32> to vector<8x128xf32>
    %29 = arith.truncf %25 : vector<8x32xf32> to vector<8x32xbf16>
    %cst_17 = arith.constant dense<0.000000e+00> : vector<8x128xf32>
    %30 = tpu.matmul %29, %15, %cst_17 {dimension_numbers = #tpu.dot_dimension_numbers<[1], [0], [0], [1], [0, 0, 1, 1], [], []>} : vector<8x32xbf16>, vector<32x128xbf16>, vector<8x128xf32> -> vector<8x128xf32>
    %31 = arith.addf %28, %30 : vector<8x128xf32>
    %32 = arith.mulf %31, %24 : vector<8x128xf32>
    %33 = arith.negf %32 : vector<8x128xf32>
    %34 = math.exp %33 : vector<8x128xf32>
    %cst_18 = arith.constant 1.000000e+00 : f32
    %35 = vector.broadcast %cst_18 : f32 to vector<8x128xf32>
    %36 = arith.addf %35, %34 : vector<8x128xf32>
    %37 = arith.divf %35, %36 : vector<8x128xf32>
    %38 = vector.extract_strided_slice %37 {offsets = [0, 0], sizes = [8, 32], strides = [1, 1]} : vector<8x128xf32> to vector<8x32xf32>
    %39 = vector.extract_strided_slice %37 {offsets = [0, 32], sizes = [8, 32], strides = [1, 1]} : vector<8x128xf32> to vector<8x32xf32>
    %40 = vector.extract_strided_slice %37 {offsets = [0, 64], sizes = [8, 32], strides = [1, 1]} : vector<8x128xf32> to vector<8x32xf32>
    %cst_19 = arith.constant 2.000000e+00 : f32
    %41 = vector.broadcast %cst_19 : f32 to vector<8x32xf32>
    %42 = arith.mulf %41, %40 : vector<8x32xf32>
    %cst_20 = arith.constant 1.000000e+00 : f32
    %43 = vector.broadcast %cst_20 : f32 to vector<8x32xf32>
    %44 = arith.subf %42, %43 : vector<8x32xf32>
    %45 = vector.extract_strided_slice %37 {offsets = [0, 96], sizes = [8, 32], strides = [1, 1]} : vector<8x128xf32> to vector<8x32xf32>
    %46 = arith.mulf %39, %26 : vector<8x32xf32>
    %47 = arith.mulf %38, %44 : vector<8x32xf32>
    %48 = arith.addf %46, %47 : vector<8x32xf32>
    %49 = math.tanh %48 : vector<8x32xf32>
    %50 = arith.mulf %45, %49 : vector<8x32xf32>
    %51 = arith.addf %27, %50 : vector<8x32xf32>
    %52 = vector.extract_strided_slice %14 {offsets = [8, 0], sizes = [8, 128], strides = [1, 1]} : vector<64x128xf32> to vector<8x128xf32>
    %53 = arith.truncf %50 : vector<8x32xf32> to vector<8x32xbf16>
    %cst_21 = arith.constant dense<0.000000e+00> : vector<8x128xf32>
    %54 = tpu.matmul %53, %15, %cst_21 {dimension_numbers = #tpu.dot_dimension_numbers<[1], [0], [0], [1], [0, 0, 1, 1], [], []>} : vector<8x32xbf16>, vector<32x128xbf16>, vector<8x128xf32> -> vector<8x128xf32>
    %55 = arith.addf %52, %54 : vector<8x128xf32>
    %56 = arith.mulf %55, %24 : vector<8x128xf32>
    %57 = arith.negf %56 : vector<8x128xf32>
    %58 = math.exp %57 : vector<8x128xf32>
    %cst_22 = arith.constant 1.000000e+00 : f32
    %59 = vector.broadcast %cst_22 : f32 to vector<8x128xf32>
    %60 = arith.addf %59, %58 : vector<8x128xf32>
    %61 = arith.divf %59, %60 : vector<8x128xf32>
    %62 = vector.extract_strided_slice %61 {offsets = [0, 0], sizes = [8, 32], strides = [1, 1]} : vector<8x128xf32> to vector<8x32xf32>
    %63 = vector.extract_strided_slice %61 {offsets = [0, 32], sizes = [8, 32], strides = [1, 1]} : vector<8x128xf32> to vector<8x32xf32>
    %64 = vector.extract_strided_slice %61 {offsets = [0, 64], sizes = [8, 32], strides = [1, 1]} : vector<8x128xf32> to vector<8x32xf32>
    %cst_23 = arith.constant 2.000000e+00 : f32
    %65 = vector.broadcast %cst_23 : f32 to vector<8x32xf32>
    %66 = arith.mulf %65, %64 : vector<8x32xf32>
    %cst_24 = arith.constant 1.000000e+00 : f32
    %67 = vector.broadcast %cst_24 : f32 to vector<8x32xf32>
    %68 = arith.subf %66, %67 : vector<8x32xf32>
    %69 = vector.extract_strided_slice %61 {offsets = [0, 96], sizes = [8, 32], strides = [1, 1]} : vector<8x128xf32> to vector<8x32xf32>
    %70 = arith.mulf %63, %48 : vector<8x32xf32>
    %71 = arith.mulf %62, %68 : vector<8x32xf32>
    %72 = arith.addf %70, %71 : vector<8x32xf32>
    %73 = math.tanh %72 : vector<8x32xf32>
    %74 = arith.mulf %69, %73 : vector<8x32xf32>
    %75 = arith.addf %51, %74 : vector<8x32xf32>
    %76 = vector.extract_strided_slice %14 {offsets = [16, 0], sizes = [8, 128], strides = [1, 1]} : vector<64x128xf32> to vector<8x128xf32>
    %77 = arith.truncf %74 : vector<8x32xf32> to vector<8x32xbf16>
    %cst_25 = arith.constant dense<0.000000e+00> : vector<8x128xf32>
    %78 = tpu.matmul %77, %15, %cst_25 {dimension_numbers = #tpu.dot_dimension_numbers<[1], [0], [0], [1], [0, 0, 1, 1], [], []>} : vector<8x32xbf16>, vector<32x128xbf16>, vector<8x128xf32> -> vector<8x128xf32>
    %79 = arith.addf %76, %78 : vector<8x128xf32>
    %80 = arith.mulf %79, %24 : vector<8x128xf32>
    %81 = arith.negf %80 : vector<8x128xf32>
    %82 = math.exp %81 : vector<8x128xf32>
    %cst_26 = arith.constant 1.000000e+00 : f32
    %83 = vector.broadcast %cst_26 : f32 to vector<8x128xf32>
    %84 = arith.addf %83, %82 : vector<8x128xf32>
    %85 = arith.divf %83, %84 : vector<8x128xf32>
    %86 = vector.extract_strided_slice %85 {offsets = [0, 0], sizes = [8, 32], strides = [1, 1]} : vector<8x128xf32> to vector<8x32xf32>
    %87 = vector.extract_strided_slice %85 {offsets = [0, 32], sizes = [8, 32], strides = [1, 1]} : vector<8x128xf32> to vector<8x32xf32>
    %88 = vector.extract_strided_slice %85 {offsets = [0, 64], sizes = [8, 32], strides = [1, 1]} : vector<8x128xf32> to vector<8x32xf32>
    %cst_27 = arith.constant 2.000000e+00 : f32
    %89 = vector.broadcast %cst_27 : f32 to vector<8x32xf32>
    %90 = arith.mulf %89, %88 : vector<8x32xf32>
    %cst_28 = arith.constant 1.000000e+00 : f32
    %91 = vector.broadcast %cst_28 : f32 to vector<8x32xf32>
    %92 = arith.subf %90, %91 : vector<8x32xf32>
    %93 = vector.extract_strided_slice %85 {offsets = [0, 96], sizes = [8, 32], strides = [1, 1]} : vector<8x128xf32> to vector<8x32xf32>
    %94 = arith.mulf %87, %72 : vector<8x32xf32>
    %95 = arith.mulf %86, %92 : vector<8x32xf32>
    %96 = arith.addf %94, %95 : vector<8x32xf32>
    %97 = math.tanh %96 : vector<8x32xf32>
    %98 = arith.mulf %93, %97 : vector<8x32xf32>
    %99 = arith.addf %75, %98 : vector<8x32xf32>
    %100 = vector.extract_strided_slice %14 {offsets = [24, 0], sizes = [8, 128], strides = [1, 1]} : vector<64x128xf32> to vector<8x128xf32>
    %101 = arith.truncf %98 : vector<8x32xf32> to vector<8x32xbf16>
    %cst_29 = arith.constant dense<0.000000e+00> : vector<8x128xf32>
    %102 = tpu.matmul %101, %15, %cst_29 {dimension_numbers = #tpu.dot_dimension_numbers<[1], [0], [0], [1], [0, 0, 1, 1], [], []>} : vector<8x32xbf16>, vector<32x128xbf16>, vector<8x128xf32> -> vector<8x128xf32>
    %103 = arith.addf %100, %102 : vector<8x128xf32>
    %104 = arith.mulf %103, %24 : vector<8x128xf32>
    %105 = arith.negf %104 : vector<8x128xf32>
    %106 = math.exp %105 : vector<8x128xf32>
    %cst_30 = arith.constant 1.000000e+00 : f32
    %107 = vector.broadcast %cst_30 : f32 to vector<8x128xf32>
    %108 = arith.addf %107, %106 : vector<8x128xf32>
    %109 = arith.divf %107, %108 : vector<8x128xf32>
    %110 = vector.extract_strided_slice %109 {offsets = [0, 0], sizes = [8, 32], strides = [1, 1]} : vector<8x128xf32> to vector<8x32xf32>
    %111 = vector.extract_strided_slice %109 {offsets = [0, 32], sizes = [8, 32], strides = [1, 1]} : vector<8x128xf32> to vector<8x32xf32>
    %112 = vector.extract_strided_slice %109 {offsets = [0, 64], sizes = [8, 32], strides = [1, 1]} : vector<8x128xf32> to vector<8x32xf32>
    %cst_31 = arith.constant 2.000000e+00 : f32
    %113 = vector.broadcast %cst_31 : f32 to vector<8x32xf32>
    %114 = arith.mulf %113, %112 : vector<8x32xf32>
    %cst_32 = arith.constant 1.000000e+00 : f32
    %115 = vector.broadcast %cst_32 : f32 to vector<8x32xf32>
    %116 = arith.subf %114, %115 : vector<8x32xf32>
    %117 = vector.extract_strided_slice %109 {offsets = [0, 96], sizes = [8, 32], strides = [1, 1]} : vector<8x128xf32> to vector<8x32xf32>
    %118 = arith.mulf %111, %96 : vector<8x32xf32>
    %119 = arith.mulf %110, %116 : vector<8x32xf32>
    %120 = arith.addf %118, %119 : vector<8x32xf32>
    %121 = math.tanh %120 : vector<8x32xf32>
    %122 = arith.mulf %117, %121 : vector<8x32xf32>
    %123 = arith.addf %99, %122 : vector<8x32xf32>
    %124 = vector.extract_strided_slice %14 {offsets = [32, 0], sizes = [8, 128], strides = [1, 1]} : vector<64x128xf32> to vector<8x128xf32>
    %125 = arith.truncf %122 : vector<8x32xf32> to vector<8x32xbf16>
    %cst_33 = arith.constant dense<0.000000e+00> : vector<8x128xf32>
    %126 = tpu.matmul %125, %15, %cst_33 {dimension_numbers = #tpu.dot_dimension_numbers<[1], [0], [0], [1], [0, 0, 1, 1], [], []>} : vector<8x32xbf16>, vector<32x128xbf16>, vector<8x128xf32> -> vector<8x128xf32>
    %127 = arith.addf %124, %126 : vector<8x128xf32>
    %128 = arith.mulf %127, %24 : vector<8x128xf32>
    %129 = arith.negf %128 : vector<8x128xf32>
    %130 = math.exp %129 : vector<8x128xf32>
    %cst_34 = arith.constant 1.000000e+00 : f32
    %131 = vector.broadcast %cst_34 : f32 to vector<8x128xf32>
    %132 = arith.addf %131, %130 : vector<8x128xf32>
    %133 = arith.divf %131, %132 : vector<8x128xf32>
    %134 = vector.extract_strided_slice %133 {offsets = [0, 0], sizes = [8, 32], strides = [1, 1]} : vector<8x128xf32> to vector<8x32xf32>
    %135 = vector.extract_strided_slice %133 {offsets = [0, 32], sizes = [8, 32], strides = [1, 1]} : vector<8x128xf32> to vector<8x32xf32>
    %136 = vector.extract_strided_slice %133 {offsets = [0, 64], sizes = [8, 32], strides = [1, 1]} : vector<8x128xf32> to vector<8x32xf32>
    %cst_35 = arith.constant 2.000000e+00 : f32
    %137 = vector.broadcast %cst_35 : f32 to vector<8x32xf32>
    %138 = arith.mulf %137, %136 : vector<8x32xf32>
    %cst_36 = arith.constant 1.000000e+00 : f32
    %139 = vector.broadcast %cst_36 : f32 to vector<8x32xf32>
    %140 = arith.subf %138, %139 : vector<8x32xf32>
    %141 = vector.extract_strided_slice %133 {offsets = [0, 96], sizes = [8, 32], strides = [1, 1]} : vector<8x128xf32> to vector<8x32xf32>
    %142 = arith.mulf %135, %120 : vector<8x32xf32>
    %143 = arith.mulf %134, %140 : vector<8x32xf32>
    %144 = arith.addf %142, %143 : vector<8x32xf32>
    %145 = math.tanh %144 : vector<8x32xf32>
    %146 = arith.mulf %141, %145 : vector<8x32xf32>
    %147 = arith.addf %123, %146 : vector<8x32xf32>
    %148 = vector.extract_strided_slice %14 {offsets = [40, 0], sizes = [8, 128], strides = [1, 1]} : vector<64x128xf32> to vector<8x128xf32>
    %149 = arith.truncf %146 : vector<8x32xf32> to vector<8x32xbf16>
    %cst_37 = arith.constant dense<0.000000e+00> : vector<8x128xf32>
    %150 = tpu.matmul %149, %15, %cst_37 {dimension_numbers = #tpu.dot_dimension_numbers<[1], [0], [0], [1], [0, 0, 1, 1], [], []>} : vector<8x32xbf16>, vector<32x128xbf16>, vector<8x128xf32> -> vector<8x128xf32>
    %151 = arith.addf %148, %150 : vector<8x128xf32>
    %152 = arith.mulf %151, %24 : vector<8x128xf32>
    %153 = arith.negf %152 : vector<8x128xf32>
    %154 = math.exp %153 : vector<8x128xf32>
    %cst_38 = arith.constant 1.000000e+00 : f32
    %155 = vector.broadcast %cst_38 : f32 to vector<8x128xf32>
    %156 = arith.addf %155, %154 : vector<8x128xf32>
    %157 = arith.divf %155, %156 : vector<8x128xf32>
    %158 = vector.extract_strided_slice %157 {offsets = [0, 0], sizes = [8, 32], strides = [1, 1]} : vector<8x128xf32> to vector<8x32xf32>
    %159 = vector.extract_strided_slice %157 {offsets = [0, 32], sizes = [8, 32], strides = [1, 1]} : vector<8x128xf32> to vector<8x32xf32>
    %160 = vector.extract_strided_slice %157 {offsets = [0, 64], sizes = [8, 32], strides = [1, 1]} : vector<8x128xf32> to vector<8x32xf32>
    %cst_39 = arith.constant 2.000000e+00 : f32
    %161 = vector.broadcast %cst_39 : f32 to vector<8x32xf32>
    %162 = arith.mulf %161, %160 : vector<8x32xf32>
    %cst_40 = arith.constant 1.000000e+00 : f32
    %163 = vector.broadcast %cst_40 : f32 to vector<8x32xf32>
    %164 = arith.subf %162, %163 : vector<8x32xf32>
    %165 = vector.extract_strided_slice %157 {offsets = [0, 96], sizes = [8, 32], strides = [1, 1]} : vector<8x128xf32> to vector<8x32xf32>
    %166 = arith.mulf %159, %144 : vector<8x32xf32>
    %167 = arith.mulf %158, %164 : vector<8x32xf32>
    %168 = arith.addf %166, %167 : vector<8x32xf32>
    %169 = math.tanh %168 : vector<8x32xf32>
    %170 = arith.mulf %165, %169 : vector<8x32xf32>
    %171 = arith.addf %147, %170 : vector<8x32xf32>
    %172 = vector.extract_strided_slice %14 {offsets = [48, 0], sizes = [8, 128], strides = [1, 1]} : vector<64x128xf32> to vector<8x128xf32>
    %173 = arith.truncf %170 : vector<8x32xf32> to vector<8x32xbf16>
    %cst_41 = arith.constant dense<0.000000e+00> : vector<8x128xf32>
    %174 = tpu.matmul %173, %15, %cst_41 {dimension_numbers = #tpu.dot_dimension_numbers<[1], [0], [0], [1], [0, 0, 1, 1], [], []>} : vector<8x32xbf16>, vector<32x128xbf16>, vector<8x128xf32> -> vector<8x128xf32>
    %175 = arith.addf %172, %174 : vector<8x128xf32>
    %176 = arith.mulf %175, %24 : vector<8x128xf32>
    %177 = arith.negf %176 : vector<8x128xf32>
    %178 = math.exp %177 : vector<8x128xf32>
    %cst_42 = arith.constant 1.000000e+00 : f32
    %179 = vector.broadcast %cst_42 : f32 to vector<8x128xf32>
    %180 = arith.addf %179, %178 : vector<8x128xf32>
    %181 = arith.divf %179, %180 : vector<8x128xf32>
    %182 = vector.extract_strided_slice %181 {offsets = [0, 0], sizes = [8, 32], strides = [1, 1]} : vector<8x128xf32> to vector<8x32xf32>
    %183 = vector.extract_strided_slice %181 {offsets = [0, 32], sizes = [8, 32], strides = [1, 1]} : vector<8x128xf32> to vector<8x32xf32>
    %184 = vector.extract_strided_slice %181 {offsets = [0, 64], sizes = [8, 32], strides = [1, 1]} : vector<8x128xf32> to vector<8x32xf32>
    %cst_43 = arith.constant 2.000000e+00 : f32
    %185 = vector.broadcast %cst_43 : f32 to vector<8x32xf32>
    %186 = arith.mulf %185, %184 : vector<8x32xf32>
    %cst_44 = arith.constant 1.000000e+00 : f32
    %187 = vector.broadcast %cst_44 : f32 to vector<8x32xf32>
    %188 = arith.subf %186, %187 : vector<8x32xf32>
    %189 = vector.extract_strided_slice %181 {offsets = [0, 96], sizes = [8, 32], strides = [1, 1]} : vector<8x128xf32> to vector<8x32xf32>
    %190 = arith.mulf %183, %168 : vector<8x32xf32>
    %191 = arith.mulf %182, %188 : vector<8x32xf32>
    %192 = arith.addf %190, %191 : vector<8x32xf32>
    %193 = math.tanh %192 : vector<8x32xf32>
    %194 = arith.mulf %189, %193 : vector<8x32xf32>
    %195 = arith.addf %171, %194 : vector<8x32xf32>
    %196 = vector.extract_strided_slice %14 {offsets = [56, 0], sizes = [8, 128], strides = [1, 1]} : vector<64x128xf32> to vector<8x128xf32>
    %197 = arith.truncf %194 : vector<8x32xf32> to vector<8x32xbf16>
    %cst_45 = arith.constant dense<0.000000e+00> : vector<8x128xf32>
    %198 = tpu.matmul %197, %15, %cst_45 {dimension_numbers = #tpu.dot_dimension_numbers<[1], [0], [0], [1], [0, 0, 1, 1], [], []>} : vector<8x32xbf16>, vector<32x128xbf16>, vector<8x128xf32> -> vector<8x128xf32>
    %199 = arith.addf %196, %198 : vector<8x128xf32>
    %200 = arith.mulf %199, %24 : vector<8x128xf32>
    %201 = arith.negf %200 : vector<8x128xf32>
    %202 = math.exp %201 : vector<8x128xf32>
    %cst_46 = arith.constant 1.000000e+00 : f32
    %203 = vector.broadcast %cst_46 : f32 to vector<8x128xf32>
    %204 = arith.addf %203, %202 : vector<8x128xf32>
    %205 = arith.divf %203, %204 : vector<8x128xf32>
    %206 = vector.extract_strided_slice %205 {offsets = [0, 0], sizes = [8, 32], strides = [1, 1]} : vector<8x128xf32> to vector<8x32xf32>
    %207 = vector.extract_strided_slice %205 {offsets = [0, 32], sizes = [8, 32], strides = [1, 1]} : vector<8x128xf32> to vector<8x32xf32>
    %208 = vector.extract_strided_slice %205 {offsets = [0, 64], sizes = [8, 32], strides = [1, 1]} : vector<8x128xf32> to vector<8x32xf32>
    %cst_47 = arith.constant 2.000000e+00 : f32
    %209 = vector.broadcast %cst_47 : f32 to vector<8x32xf32>
    %210 = arith.mulf %209, %208 : vector<8x32xf32>
    %cst_48 = arith.constant 1.000000e+00 : f32
    %211 = vector.broadcast %cst_48 : f32 to vector<8x32xf32>
    %212 = arith.subf %210, %211 : vector<8x32xf32>
    %213 = vector.extract_strided_slice %205 {offsets = [0, 96], sizes = [8, 32], strides = [1, 1]} : vector<8x128xf32> to vector<8x32xf32>
    %214 = arith.mulf %207, %192 : vector<8x32xf32>
    %215 = arith.mulf %206, %212 : vector<8x32xf32>
    %216 = arith.addf %214, %215 : vector<8x32xf32>
    %217 = math.tanh %216 : vector<8x32xf32>
    %218 = arith.mulf %213, %217 : vector<8x32xf32>
    %219 = arith.addf %195, %218 : vector<8x32xf32>
    %cst_49 = arith.constant 1.250000e-01 : f32
    %220 = vector.broadcast %cst_49 : f32 to vector<8x32xf32>
    %221 = arith.mulf %219, %220 : vector<8x32xf32>
    %c0_50 = arith.constant 0 : index
    %c0_51 = arith.constant 0 : index
    %222 = vector.load %arg7[%c0_50, %c0_51] : memref<8x32xf32, #tpu.memory_space<vmem>>, vector<8x32xf32>
    tpu.vector_store %arg7[%c0_50, %c0_51], %221 {strides = array<i32>} : memref<8x32xf32, #tpu.memory_space<vmem>>, vector<8x32xf32>,
    return
  }
}

</mosaic_0001>

<bundles_post_ra>
// kernel: lstm_model_forward.1
= control target key start
LH: loop header
LB: loop body
LE: loop exit
PB: predicated region body
PF: predicated region fallthrough
CT: control target
= control target key end

     0   :  { %v930_v0 = vmov 0   ;;  %vm206_vm0 = vcmask 261120   ;;  %v35_v16 = vlaneseq  ;;  %v931_v19 = vmov 1.0|1.0   ;;  %s934_s8 = smov 32   ;;  %s1154_s0 = inlined_call_operand.vmem [shape: s32[64,1], index: 0, kind: input, shape index: {}]   ;;  %s1155_s1 = inlined_call_operand.vmem [shape: bf16[128,32], index: 1, kind: input, shape index: {}]   ;;  %s1156_s3 = inlined_call_operand.vmem [shape: bf16[32,128], index: 3, kind: input, shape index: {}]   ;;  %s1157_s5 = inlined_call_operand.vmem [shape: f32[8,32], index: 5, kind: input, shape index: {}]   ;;  %s1158_s4 = inlined_call_operand.vmem [shape: f32[1,128], index: 4, kind: input, shape index: {}]   ;;  %s1159_s2 = inlined_call_operand.vmem [shape: bf16[32,128], index: 2, kind: input, shape index: {}]   ;;  %s1160_s6 = inlined_call_operand.vmem [shape: f32[8,32], index: 6, kind: input, shape index: {}]   ;;  %s1161_s7 = inlined_call_operand.vmem [shape: f32[8,32], index: 7, kind: output, shape index: {}]  }
   0x1   :  { %878 = vset.pattern.permute.xlu0 %v930_v0  ;;  %v27_v1 = vld [vmem:[%s1154_s0] sm:$0xff]  ;;  %v868_v2 = vld [vmem:[%s1155_s1 + $0x38] sm:$0xff]  ;;  %879 = vset.pattern.permute.xlu1 %v930_v0  ;;  %v867_v3 = vld [vmem:[%s1155_s1 + $0x30] sm:$0xff]  ;;  %v932_v30 = vmov 1.0  }
   0x2   :  { %38 = vperm.xlu0 %878, %v27_v1   ;;  %880 = vset.pattern.permute.xlu2 %v930_v0  ;;  %v28_v4 = vld [vmem:[%s1154_s0 + $0x8] sm:$0xff]  ;;  %v865_v6 = vld [vmem:[%s1155_s1 + $0x20] sm:$0xff]  ;;  %v864_v7 = vld [vmem:[%s1155_s1 + $0x18] sm:$0xff]  ;;  %v1029_v17 = vand.u32 127, %v35_v16 }
   0x3   :  { %153 = vmatpush.bf16.msra.mxu0 %v868_v2  ;;  %v866_v5 = vld [vmem:[%s1155_s1 + $0x28] sm:$0xff]  ;;  %v863_v8 = vld [vmem:[%s1155_s1 + $0x10] sm:$0xff]  ;;  %v861_v10 = vld [vmem:[%s1155_s1] sm:$0xff] }
   0x4   :  { %v862_v9 = vld [vmem:[%s1155_s1 + $0x8] sm:$0xff]  ;;  %v1014_v12 = vld [vmem:[%s1156_s3] sm:$0xff]  ;;  %vm252_vm4 = vcmp.ge.s32.totalorder %v1029_v17, 64  ;;  %vm253_vm5 = vcmp.lt.s32.totalorder %v1029_v17, 96 }
   0x5   :  { %v1008_v11 = vld [vmem:[%s1156_s3 + $0x8] sm:$0xff]  ;;  %v256_v13 = vld [vmem:[%s1157_s5] sm:$0xff]  ;;  %vm254_vm6 = vmand %vm252_vm4, %vm253_vm5 }
   0x6   :  { %280 = vmatpush.bf16.msra.mxu2 %v1008_v11  ;;  %345 = vmatpush.bf16.msra.mxu3 %v1008_v11  ;;  %v258_v14 = vpack.c.bf16 %v256_v13, %v256_v13  ;;  %v870_v20 = vld [vmem:[%s1159_s2 + $0x8] sm:$0xff]  ;;  %v869_v21 = vld [vmem:[%s1159_s2] sm:$0xff]  ;;  %v1049_v31 = vsel %vm254_vm6, 2.0, %v932_v30  ;;  %s933_s2 = smov 64  }
   0x7   :  { %154 = vmatpush.bf16.msra.mxu0 %v867_v3  ;;  %225 = vmatpush.bf16.msra.mxu1 %v870_v20  ;;  %v1046_v27 = vld [vmem:[%s1158_s4] ss:$0 sm:$0xff]  ;;  %v29_v3 = vld [vmem:[%s1154_s0 + $0x10] sm:$0xff] }
   0x8   :  { %v257_v49 = vld [vmem:[%s1160_s6] sm:$0xff] }
   0xa   :  { %41 = vperm.xlu0 %878, %v28_v4   ;;  %281 = vmatpush.bf16.msra.mxu2 %v1014_v12 }
   0xb   :  { %155 = vmatpush.bf16.msra.mxu0 %v866_v5  ;;  %346 = vmatpush.bf16.msra.mxu3 %v1014_v12 }
   0xc   :  { %226 = vmatpush.bf16.msra.mxu1 %v869_v21 }
   0xd   :  { %837 = vmatmul.msk.bf16.vlgmr.msra.gmra.mxu2 %vm206_vm0, %v258_v14 }
   0xe   :  { %406 = vmatpush.bf16.msrb.mxu2 %v1008_v11 }
   0xf   :  { %156 = vmatpush.bf16.msra.mxu0 %v865_v6  ;;  %467 = vmatpush.bf16.msrb.mxu3 %v1008_v11 }
  0x12   :  { %407 = vmatpush.bf16.msrb.mxu2 %v1014_v12 }
  0x13   :  { %157 = vmatpush.bf16.msra.mxu0 %v864_v7  ;;  %468 = vmatpush.bf16.msrb.mxu3 %v1014_v12 }
  0x16   :  { %528 = vmatpush.bf16.msra.mxu2 %v1008_v11 }
  0x17   :  { %158 = vmatpush.bf16.msra.mxu0 %v863_v8 }
  0x1a   :  { %529 = vmatpush.bf16.msra.mxu2 %v1014_v12 }
  0x1b   :  { %159 = vmatpush.bf16.msra.mxu0 %v862_v9 }
  0x1f   :  { %160 = vmatpush.bf16.msra.mxu0 %v861_v10 }
  0x74   :  { %v39_v15 = vpop.permute.xlu0 %38 }
  0x75   :  { %vm61_vm1 = vcmp.eq.s32.totalorder %v1029_v17, %v39_v15 }
  0x7c   :  { %v42_v18 = vpop.permute.xlu0 %41 }
  0x7d   :  { %vm62_vm2 = vcmp.eq.s32.totalorder %v1029_v17, %v42_v18 }
  0x7e   :  { %vm809_vm3 = vmpackc.low %vm62_vm2, %vm61_vm1 }
  0x7f   :  { %810 = vmatmul.msk.bf16.vlgmr.msra.gmra.mxu0 %vm809_vm3, %v931_v19 }
  0x90   :  { %v283_v22 = vpop.f32.mrf.mxu2 }
  0x98   :  { %v285_v23 = vpop.f32.mrf.mxu2 }
  0x99   :  { %v30_v23 = vld [vmem:[%s1154_s0 + $0x18] sm:$0xff] }
  0xfc   :  { %v162_v24 = vpop.f32.mrf.mxu0 }
 0x104   :  { %v164_v25 = vpop.f32.mrf.mxu0 }
 0x105   :  { %v182_v26 = vpack.c.bf16 %v164_v25, %v162_v24 }
 0x107   :  { %825 = vmatmul.msk.bf16.vlgmr.msra.gmra.mxu1 %vm206_vm0, %v182_v26 }
 0x184   :  { %v228_v28 = vpop.f32.mrf.mxu1 }
 0x185   :  { %v229_v29 = vadd.f32 %v1046_v27, %v228_v28 }
 0x187   :  { %v287_v32 = vadd.f32 %v283_v22, %v229_v29 }
 0x189   :  { %v288_v33 = vmul.f32 %v287_v32, %v1049_v31 }
 0x18b   :  { %v838_v34 = vmul.f32 -1.442695, %v288_v33 }
 0x18c   :  { %v230_v61 = vpop.f32.mrf.mxu1 }
 0x18d   :  { %882 = vpow2.f32 %v838_v34  ;;  %v231_v62 = vadd.f32 %v1046_v27, %v230_v61 }
 0x193   :  { %v883_v35 = vpop.eup %882 }
 0x194   :  { %v292_v36 = vadd.f32 1.0, %v883_v35 }
 0x196   :  { %884 = vrcp.f32 %v292_v36  ;;  %v304_v40 = vand.u32 2147483648, %v292_v36  ;;  %v302_v42 = vand.u32 2147483647, %v292_v36  ;;  %vm298_vm8 = vweird.f32 %v292_v36 }
 0x198   :  { %v305_v44 = vor.u32 1.1754944e-38, %v304_v40  ;;  %vm303_vm10 = vcmp.eq.f32.partialorder %v302_v42, 8.507059e+37 }
 0x19c   :  { %v885_v37 = vpop.eup %884 }
 0x19d   :  { %v294_v38 = vmul.f32 %v885_v37, %v292_v36  ;;  %vm299_vm7 = vweird.f32 %v885_v37 }
 0x19e   :  { %vm300_vm9 = vmor %vm298_vm8, %vm299_vm7 }
 0x19f   :  { %v295_v39 = vsub.f32 1.0, %v294_v38 }
 0x1a1   :  { %v296_v41 = vmul.f32 %v885_v37, %v295_v39 }
 0x1a3   :  { %v297_v43 = vadd.f32 %v885_v37, %v296_v41 }
 0x1a5   :  { %v301_v45 = vsel %vm300_vm9, %v885_v37, %v297_v43 }
 0x1a6   :  { %v306_v46 = vsel %vm303_vm10, %v305_v44, %v301_v45 }
 0x1a7   :  { %v308_v47 = vmul.f32 2.0, %v306_v46 }
 0x1a9   :  { %v839_v48 = vadd.f32 -1.0, %v308_v47 }
 0x1ab   :  { %316 = vrot.lane.b32.xlu1 %v839_v48, %s933_s2 }
 0x1b3   :  { %311 = vrot.lane.b32.xlu1 %v257_v49, %s934_s8 }
 0x1bb   :  { %44 = vperm.xlu1 %879, %v29_v3  }
 0x21d   :  { %v317_v50 = vpop.permute.xlu1 %316 }
 0x21e   :  { %v319_v51 = vmul.f32 %v317_v50, %v306_v46 }
 0x220   :  { %321 = vrot.lane.b32.xlu2 %v319_v51, %s934_s8 }
 0x225   :  { %v312_v52 = vpop.permute.xlu1 %311 }
 0x226   :  { %v314_v53 = vmul.f32 %v312_v52, %v306_v46 }
 0x22d   :  { %v45_v26 = vpop.permute.xlu1 %44 }
 0x22e   :  { %vm63_vm15 = vcmp.eq.s32.totalorder %v1029_v17, %v45_v26 }
 0x27a   :  { %v322_v54 = vpop.permute.xlu2 %321 }
 0x27b   :  { %v324_v55 = vadd.f32 %v322_v54, %v314_v53 }
 0x27d   :  { %886 = vtanh.f32 %v324_v55 }
 0x283   :  { %v887_v56 = vpop.eup %886 }
 0x284   :  { %327 = vrot.lane.b32.xlu2 %v887_v56, %s933_s2 }
 0x28c   :  { %47 = vperm.xlu2 %880, %v30_v23  }
 0x2de   :  { %v328_v57 = vpop.permute.xlu2 %327 }
 0x2df   :  { %v1059_v58 = vmul.f32 %v328_v57, %v306_v46 }
 0x2e1   :  { %v332_v59 = vpack.c.bf16 %v1059_v58, %v1059_v58 }
 0x2e3   :  { %334 = vrot.lane.b32.xlu0 %v332_v59, %s934_s8 }
 0x2e6   :  { %v48_v28 = vpop.permute.xlu2 %47 }
 0x2e7   :  { %vm64_vm1 = vcmp.eq.s32.totalorder %v1029_v17, %v48_v28 }
 0x2e8   :  { %vm811_vm2 = vmpackc.low %vm64_vm1, %vm63_vm15 }
 0x2e9   :  { %812 = vmatmul.msk.bf16.gmra.mxu0 %vm811_vm2, %v931_v19 }
 0x355   :  { %v335_v60 = vpop.permute.xlu0 %334 }
 0x356   :  { %840 = vmatmul.msk.bf16.vlgmr.msra.gmra.mxu3 %vm206_vm0, %v335_v60 }
 0x357   :  { %589 = vmatpush.bf16.msra.mxu3 %v1008_v11 }
 0x35b   :  { %590 = vmatpush.bf16.msra.mxu3 %v1014_v12 }
 0x366   :  { %v167_v34 = vpop.f32.mrf.mxu0 }
 0x36e   :  { %v169_v35 = vpop.f32.mrf.mxu0 }
 0x36f   :  { %v183_v36 = vpack.c.bf16 %v169_v35, %v167_v34 }
 0x371   :  { %826 = vmatmul.msk.bf16.gmra.mxu1 %vm206_vm0, %v183_v36 }
 0x3d9   :  { %v348_v63 = vpop.f32.mrf.mxu3 }
 0x3da   :  { %v352_v0 = vadd.f32 %v348_v63, %v231_v62 }
 0x3dc   :  { %v353_v1 = vmul.f32 %v352_v0, %v1049_v31 }
 0x3de   :  { %v841_v2 = vmul.f32 -1.442695, %v353_v1  ;;  %v31_v1 = vld [vmem:[%s1154_s0 + $0x20] sm:$0xff] }
 0x3e0   :  { %888 = vpow2.f32 %v841_v2 }
 0x3e1   :  { %v350_v4 = vpop.f32.mrf.mxu3 }
 0x3e6   :  { %v889_v5 = vpop.eup %888 }
 0x3e7   :  { %v357_v6 = vadd.f32 1.0, %v889_v5 }
 0x3e9   :  { %890 = vrcp.f32 %v357_v6  ;;  %v369_v10 = vand.u32 2147483648, %v357_v6  ;;  %v367_v14 = vand.u32 2147483647, %v357_v6  ;;  %vm363_vm12 = vweird.f32 %v357_v6 }
 0x3eb   :  { %v370_v16 = vor.u32 1.1754944e-38, %v369_v10  ;;  %vm368_vm14 = vcmp.eq.f32.partialorder %v367_v14, 8.507059e+37 }
 0x3ee   :  { %v233_v41 = vpop.f32.mrf.mxu1 }
 0x3ef   :  { %v891_v7 = vpop.eup %890  ;;  %v234_v42 = vadd.f32 %v1046_v27, %v233_v41 }
 0x3f0   :  { %v359_v8 = vmul.f32 %v891_v7, %v357_v6  ;;  %vm364_vm11 = vweird.f32 %v891_v7  ;;  %v32_v6 = vld [vmem:[%s1154_s0 + $0x28] sm:$0xff] }
 0x3f1   :  { %vm365_vm13 = vmor %vm363_vm12, %vm364_vm11 }
 0x3f2   :  { %v360_v9 = vsub.f32 1.0, %v359_v8 }
 0x3f4   :  { %v361_v13 = vmul.f32 %v891_v7, %v360_v9 }
 0x3f6   :  { %v362_v15 = vadd.f32 %v891_v7, %v361_v13 }
 0x3f8   :  { %v366_v18 = vsel %vm365_vm13, %v891_v7, %v362_v15 }
 0x3f9   :  { %v371_v20 = vsel %vm368_vm14, %v370_v16, %v366_v18 }
 0x3fa   :  { %v373_v21 = vmul.f32 2.0, %v371_v20  ;;  %v375_v29 = vmul.f32 %v371_v20, %v324_v55 }
 0x3fc   :  { %v842_v22 = vadd.f32 -1.0, %v373_v21  ;;  %v235_v21 = vpop.f32.mrf.mxu1 }
 0x3fe   :  { %377 = vrot.lane.b32.xlu0 %v842_v22, %s933_s2  ;;  %v236_v22 = vadd.f32 %v1046_v27, %v235_v21  ;;  %v34_v21 = vld [vmem:[%s1154_s0 + $0x38] sm:$0xff] }
 0x470   :  { %v378_v24 = vpop.permute.xlu0 %377 }
 0x471   :  { %v380_v25 = vmul.f32 %v378_v24, %v371_v20 }
 0x473   :  { %382 = vrot.lane.b32.xlu1 %v380_v25, %s934_s8 }
 0x4e5   :  { %v383_v30 = vpop.permute.xlu1 %382 }
 0x4e6   :  { %v385_v32 = vadd.f32 %v383_v30, %v375_v29 }
 0x4e8   :  { %892 = vtanh.f32 %v385_v32 }
 0x4ee   :  { %v893_v33 = vpop.eup %892 }
 0x4ef   :  { %388 = vrot.lane.b32.xlu2 %v893_v33, %s933_s2 }
 0x549   :  { %v389_v37 = vpop.permute.xlu2 %388 }
 0x54a   :  { %v391_v38 = vmul.f32 %v389_v37, %v371_v20 }
 0x54c   :  { %v393_v39 = vpack.c.bf16 %v391_v38, %v391_v38  ;;  %v392_v8 = vadd.f32 %v391_v38, %v1059_v58 }
 0x54e   :  { %395 = vrot.lane.b32.xlu0 %v393_v39, %s934_s8 }
 0x5c0   :  { %v396_v40 = vpop.permute.xlu0 %395 }
 0x5c1   :  { %843 = vmatmul.msk.bf16.vlgmr.msrb.gmra.mxu2 %vm206_vm0, %v396_v40 }
 0x5c2   :  { %650 = vmatpush.bf16.msrb.mxu2 %v1008_v11 }
 0x5c6   :  { %651 = vmatpush.bf16.msrb.mxu2 %v1014_v12 }
 0x644   :  { %v409_v43 = vpop.f32.mrf.mxu2 }
 0x645   :  { %v413_v44 = vadd.f32 %v409_v43, %v234_v42 }
 0x647   :  { %v414_v45 = vmul.f32 %v413_v44, %v1049_v31 }
 0x649   :  { %v844_v46 = vmul.f32 -1.442695, %v414_v45 }
 0x64b   :  { %894 = vpow2.f32 %v844_v46 }
 0x64c   :  { %v411_v47 = vpop.f32.mrf.mxu2 }
 0x651   :  { %v895_v48 = vpop.eup %894 }
 0x652   :  { %v418_v49 = vadd.f32 1.0, %v895_v48 }
 0x654   :  { %896 = vrcp.f32 %v418_v49  ;;  %v430_v53 = vand.u32 2147483648, %v418_v49  ;;  %v428_v55 = vand.u32 2147483647, %v418_v49  ;;  %vm424_vm4 = vweird.f32 %v418_v49 }
 0x656   :  { %v431_v57 = vor.u32 1.1754944e-38, %v430_v53  ;;  %vm429_vm6 = vcmp.eq.f32.partialorder %v428_v55, 8.507059e+37 }
 0x65a   :  { %v897_v50 = vpop.eup %896 }
 0x65b   :  { %v420_v51 = vmul.f32 %v897_v50, %v418_v49  ;;  %vm425_vm3 = vweird.f32 %v897_v50 }
 0x65c   :  { %vm426_vm5 = vmor %vm424_vm4, %vm425_vm3 }
 0x65d   :  { %v421_v52 = vsub.f32 1.0, %v420_v51 }
 0x65f   :  { %v422_v54 = vmul.f32 %v897_v50, %v421_v52 }
 0x661   :  { %v423_v56 = vadd.f32 %v897_v50, %v422_v54 }
 0x663   :  { %v427_v59 = vsel %vm426_vm5, %v897_v50, %v423_v56 }
 0x664   :  { %v432_v60 = vsel %vm429_vm6, %v431_v57, %v427_v59 }
 0x665   :  { %v434_v61 = vmul.f32 2.0, %v432_v60  ;;  %v436_v2 = vmul.f32 %v432_v60, %v385_v32 }
 0x667   :  { %v845_v62 = vadd.f32 -1.0, %v434_v61 }
 0x669   :  { %438 = vrot.lane.b32.xlu1 %v845_v62, %s933_s2 }
 0x6db   :  { %v439_v63 = vpop.permute.xlu1 %438 }
 0x6dc   :  { %v441_v0 = vmul.f32 %v439_v63, %v432_v60 }
 0x6de   :  { %443 = vrot.lane.b32.xlu2 %v441_v0, %s934_s8 }
 0x6e6   :  { %50 = vperm.xlu2 %880, %v31_v1  }
 0x738   :  { %v444_v3 = vpop.permute.xlu2 %443 }
 0x739   :  { %v446_v4 = vadd.f32 %v444_v3, %v436_v2 }
 0x73b   :  { %898 = vtanh.f32 %v446_v4 }
 0x740   :  { %v51_v14 = vpop.permute.xlu2 %50 }
 0x741   :  { %v899_v5 = vpop.eup %898  ;;  %vm65_vm7 = vcmp.eq.s32.totalorder %v1029_v17, %v51_v14 }
 0x742   :  { %449 = vrot.lane.b32.xlu0 %v899_v5, %s933_s2 }
 0x74a   :  { %53 = vperm.xlu0 %878, %v32_v6  }
 0x7b4   :  { %v450_v7 = vpop.permute.xlu0 %449 }
 0x7b5   :  { %v452_v9 = vmul.f32 %v450_v7, %v432_v60 }
 0x7b7   :  { %v453_v10 = vadd.f32 %v452_v9, %v392_v8  ;;  %v454_v13 = vpack.c.bf16 %v452_v9, %v452_v9 }
 0x7b9   :  { %456 = vrot.lane.b32.xlu1 %v454_v13, %s934_s8 }
 0x7bc   :  { %v54_v15 = vpop.permute.xlu0 %53 }
 0x7bd   :  { %vm66_vm8 = vcmp.eq.s32.totalorder %v1029_v17, %v54_v15  ;;  %v33_v15 = vld [vmem:[%s1154_s0 + $0x30] sm:$0xff] }
 0x7be   :  { %vm813_vm9 = vmpackc.low %vm66_vm8, %vm65_vm7 }
 0x7bf   :  { %814 = vmatmul.msk.bf16.gmra.mxu0 %vm813_vm9, %v931_v19 }
 0x82b   :  { %v457_v16 = vpop.permute.xlu1 %456 }
 0x82c   :  { %846 = vmatmul.msk.bf16.vlgmr.msrb.gmra.mxu3 %vm206_vm0, %v457_v16 }
 0x82d   :  { %711 = vmatpush.bf16.msrb.mxu3 %v1008_v11 }
 0x831   :  { %712 = vmatpush.bf16.msrb.mxu3 %v1014_v12 }
 0x83c   :  { %v172_v58 = vpop.f32.mrf.mxu0 }
 0x844   :  { %v174_v18 = vpop.f32.mrf.mxu0 }
 0x845   :  { %v184_v20 = vpack.c.bf16 %v174_v18, %v172_v58 }
 0x847   :  { %827 = vmatmul.msk.bf16.gmra.mxu1 %vm206_vm0, %v184_v20 }
 0x8af   :  { %v470_v23 = vpop.f32.mrf.mxu3 }
 0x8b0   :  { %v474_v24 = vadd.f32 %v470_v23, %v236_v22 }
 0x8b2   :  { %v475_v25 = vmul.f32 %v474_v24, %v1049_v31 }
 0x8b4   :  { %v847_v26 = vmul.f32 -1.442695, %v475_v25 }
 0x8b6   :  { %900 = vpow2.f32 %v847_v26 }
 0x8b7   :  { %v472_v28 = vpop.f32.mrf.mxu3 }
 0x8bc   :  { %v901_v29 = vpop.eup %900 }
 0x8bd   :  { %v479_v30 = vadd.f32 1.0, %v901_v29 }
 0x8bf   :  { %902 = vrcp.f32 %v479_v30  ;;  %v491_v33 = vand.u32 2147483648, %v479_v30  ;;  %v489_v35 = vand.u32 2147483647, %v479_v30  ;;  %vm485_vm11 = vweird.f32 %v479_v30 }
 0x8c1   :  { %v492_v37 = vor.u32 1.1754944e-38, %v491_v33  ;;  %vm490_vm13 = vcmp.eq.f32.partialorder %v489_v35, 8.507059e+37 }
 0x8c4   :  { %v238_v53 = vpop.f32.mrf.mxu1 }
 0x8c5   :  { %v903_v11 = vpop.eup %902  ;;  %v239_v54 = vadd.f32 %v1046_v27, %v238_v53 }
 0x8c6   :  { %v481_v12 = vmul.f32 %v903_v11, %v479_v30  ;;  %vm486_vm10 = vweird.f32 %v903_v11 }
 0x8c7   :  { %vm487_vm12 = vmor %vm485_vm11, %vm486_vm10 }
 0x8c8   :  { %v482_v32 = vsub.f32 1.0, %v481_v12 }
 0x8ca   :  { %v483_v34 = vmul.f32 %v903_v11, %v482_v32 }
 0x8cc   :  { %v484_v36 = vadd.f32 %v903_v11, %v483_v34  ;;  %v240_v32 = vpop.f32.mrf.mxu1 }
 0x8cd   :  { %v241_v33 = vadd.f32 %v1046_v27, %v240_v32 }
 0x8ce   :  { %v488_v38 = vsel %vm487_vm12, %v903_v11, %v484_v36 }
 0x8cf   :  { %v493_v39 = vsel %vm490_vm13, %v492_v37, %v488_v38 }
 0x8d0   :  { %v495_v40 = vmul.f32 2.0, %v493_v39  ;;  %v497_v44 = vmul.f32 %v493_v39, %v446_v4 }
 0x8d2   :  { %v848_v41 = vadd.f32 -1.0, %v495_v40 }
 0x8d4   :  { %499 = vrot.lane.b32.xlu1 %v848_v41, %s933_s2 }
 0x946   :  { %v500_v42 = vpop.permute.xlu1 %499 }
 0x947   :  { %v502_v43 = vmul.f32 %v500_v42, %v493_v39 }
 0x949   :  { %504 = vrot.lane.b32.xlu2 %v502_v43, %s934_s8 }
 0x9a3   :  { %v505_v45 = vpop.permute.xlu2 %504 }
 0x9a4   :  { %v507_v46 = vadd.f32 %v505_v45, %v497_v44 }
 0x9a6   :  { %904 = vtanh.f32 %v507_v46 }
 0x9ac   :  { %v905_v47 = vpop.eup %904 }
 0x9ad   :  { %510 = vrot.lane.b32.xlu0 %v905_v47, %s933_s2 }
 0xa1f   :  { %v511_v48 = vpop.permute.xlu0 %510 }
 0xa20   :  { %v513_v49 = vmul.f32 %v511_v48, %v493_v39 }
 0xa22   :  { %v514_v50 = vadd.f32 %v513_v49, %v453_v10  ;;  %v515_v51 = vpack.c.bf16 %v513_v49, %v513_v49 }
 0xa24   :  { %517 = vrot.lane.b32.xlu1 %v515_v51, %s934_s8 }
 0xa96   :  { %v518_v52 = vpop.permute.xlu1 %517 }
 0xa97   :  { %849 = vmatmul.msk.bf16.vlgmr.msra.gmra.mxu2 %vm206_vm0, %v518_v52 }
 0xb1a   :  { %v531_v55 = vpop.f32.mrf.mxu2 }
 0xb1b   :  { %v535_v56 = vadd.f32 %v531_v55, %v239_v54 }
 0xb1d   :  { %v536_v57 = vmul.f32 %v535_v56, %v1049_v31 }
 0xb1f   :  { %v850_v59 = vmul.f32 -1.442695, %v536_v57 }
 0xb21   :  { %906 = vpow2.f32 %v850_v59 }
 0xb22   :  { %v533_v60 = vpop.f32.mrf.mxu2 }
 0xb27   :  { %v907_v61 = vpop.eup %906 }
 0xb28   :  { %v540_v62 = vadd.f32 1.0, %v907_v61 }
 0xb2a   :  { %908 = vrcp.f32 %v540_v62  ;;  %v552_v2 = vand.u32 2147483648, %v540_v62  ;;  %v550_v4 = vand.u32 2147483647, %v540_v62  ;;  %vm546_vm15 = vweird.f32 %v540_v62 }
 0xb2c   :  { %v553_v6 = vor.u32 1.1754944e-38, %v552_v2  ;;  %vm551_vm2 = vcmp.eq.f32.partialorder %v550_v4, 8.507059e+37 }
 0xb30   :  { %v909_v63 = vpop.eup %908 }
 0xb31   :  { %v542_v0 = vmul.f32 %v909_v63, %v540_v62  ;;  %vm547_vm14 = vweird.f32 %v909_v63 }
 0xb32   :  { %vm548_vm1 = vmor %vm546_vm15, %vm547_vm14 }
 0xb33   :  { %v543_v1 = vsub.f32 1.0, %v542_v0 }
 0xb35   :  { %v544_v3 = vmul.f32 %v909_v63, %v543_v1 }
 0xb37   :  { %v545_v5 = vadd.f32 %v909_v63, %v544_v3 }
 0xb39   :  { %v549_v7 = vsel %vm548_vm1, %v909_v63, %v545_v5 }
 0xb3a   :  { %v554_v8 = vsel %vm551_vm2, %v553_v6, %v549_v7 }
 0xb3b   :  { %v556_v9 = vmul.f32 2.0, %v554_v8  ;;  %v558_v16 = vmul.f32 %v554_v8, %v507_v46 }
 0xb3d   :  { %v851_v10 = vadd.f32 -1.0, %v556_v9 }
 0xb3f   :  { %560 = vrot.lane.b32.xlu2 %v851_v10, %s933_s2 }
 0xb99   :  { %v561_v13 = vpop.permute.xlu2 %560 }
 0xb9a   :  { %v563_v14 = vmul.f32 %v561_v13, %v554_v8 }
 0xb9c   :  { %565 = vrot.lane.b32.xlu0 %v563_v14, %s934_s8 }
 0xba4   :  { %56 = vperm.xlu0 %878, %v33_v15  }
 0xc0e   :  { %v566_v58 = vpop.permute.xlu0 %565 }
 0xc0f   :  { %v568_v18 = vadd.f32 %v566_v58, %v558_v16 }
 0xc11   :  { %910 = vtanh.f32 %v568_v18 }
 0xc16   :  { %v57_v26 = vpop.permute.xlu0 %56 }
 0xc17   :  { %v911_v20 = vpop.eup %910  ;;  %vm67_vm3 = vcmp.eq.s32.totalorder %v1029_v17, %v57_v26 }
 0xc18   :  { %571 = vrot.lane.b32.xlu1 %v911_v20, %s933_s2 }
 0xc20   :  { %59 = vperm.xlu1 %879, %v34_v21  }
 0xc8a   :  { %v572_v22 = vpop.permute.xlu1 %571 }
 0xc8b   :  { %v574_v23 = vmul.f32 %v572_v22, %v554_v8 }
 0xc8d   :  { %v575_v24 = vadd.f32 %v574_v23, %v514_v50  ;;  %v576_v25 = vpack.c.bf16 %v574_v23, %v574_v23 }
 0xc8f   :  { %578 = vrot.lane.b32.xlu2 %v576_v25, %s934_s8 }
 0xc92   :  { %v60_v28 = vpop.permute.xlu1 %59 }
 0xc93   :  { %vm68_vm4 = vcmp.eq.s32.totalorder %v1029_v17, %v60_v28 }
 0xc94   :  { %vm815_vm5 = vmpackc.low %vm68_vm4, %vm67_vm3 }
 0xc95   :  { %816 = vmatmul.msk.bf16.gmra.mxu0 %vm815_vm5, %v931_v19 }
 0xce9   :  { %v579_v29 = vpop.permute.xlu2 %578 }
 0xcea   :  { %852 = vmatmul.msk.bf16.vlgmr.msra.gmra.mxu3 %vm206_vm0, %v579_v29 }
 0xd12   :  { %v177_v30 = vpop.f32.mrf.mxu0 }
 0xd1a   :  { %v179_v11 = vpop.f32.mrf.mxu0 }
 0xd1b   :  { %v185_v12 = vpack.c.bf16 %v179_v11, %v177_v30 }
 0xd1d   :  { %828 = vmatmul.msk.bf16.gmra.mxu1 %vm206_vm0, %v185_v12 }
 0xd6d   :  { %v592_v34 = vpop.f32.mrf.mxu3 }
 0xd6e   :  { %v596_v35 = vadd.f32 %v592_v34, %v241_v33 }
 0xd70   :  { %v597_v36 = vmul.f32 %v596_v35, %v1049_v31 }
 0xd72   :  { %v853_v37 = vmul.f32 -1.442695, %v597_v36 }
 0xd74   :  { %912 = vpow2.f32 %v853_v37 }
 0xd75   :  { %v594_v17 = vpop.f32.mrf.mxu3 }
 0xd7a   :  { %v913_v38 = vpop.eup %912 }
 0xd7b   :  { %v601_v19 = vadd.f32 1.0, %v913_v38 }
 0xd7d   :  { %914 = vrcp.f32 %v601_v19  ;;  %v613_v42 = vand.u32 2147483648, %v601_v19  ;;  %v611_v44 = vand.u32 2147483647, %v601_v19  ;;  %vm607_vm7 = vweird.f32 %v601_v19 }
 0xd7f   :  { %v614_v46 = vor.u32 1.1754944e-38, %v613_v42  ;;  %vm612_vm9 = vcmp.eq.f32.partialorder %v611_v44, 8.507059e+37 }
 0xd83   :  { %v915_v39 = vpop.eup %914 }
 0xd84   :  { %v603_v40 = vmul.f32 %v915_v39, %v601_v19  ;;  %vm608_vm6 = vweird.f32 %v915_v39 }
 0xd85   :  { %vm609_vm8 = vmor %vm607_vm7, %vm608_vm6 }
 0xd86   :  { %v604_v41 = vsub.f32 1.0, %v603_v40 }
 0xd88   :  { %v605_v43 = vmul.f32 %v915_v39, %v604_v41 }
 0xd8a   :  { %v606_v45 = vadd.f32 %v915_v39, %v605_v43 }
 0xd8c   :  { %v610_v47 = vsel %vm609_vm8, %v915_v39, %v606_v45 }
 0xd8d   :  { %v615_v48 = vsel %vm612_vm9, %v614_v46, %v610_v47 }
 0xd8e   :  { %v617_v49 = vmul.f32 2.0, %v615_v48  ;;  %v619_v53 = vmul.f32 %v615_v48, %v568_v18 }
 0xd90   :  { %v854_v50 = vadd.f32 -1.0, %v617_v49 }
 0xd92   :  { %621 = vrot.lane.b32.xlu2 %v854_v50, %s933_s2 }
 0xd9a   :  { %v243_v63 = vpop.f32.mrf.mxu1 }
 0xd9b   :  { %v244_v0 = vadd.f32 %v1046_v27, %v243_v63 }
 0xda2   :  { %v245_v34 = vpop.f32.mrf.mxu1 }
 0xda3   :  { %v246_v35 = vadd.f32 %v1046_v27, %v245_v34 }
 0xdec   :  { %v622_v51 = vpop.permute.xlu2 %621 }
 0xded   :  { %v624_v52 = vmul.f32 %v622_v51, %v615_v48 }
 0xdef   :  { %626 = vrot.lane.b32.xlu0 %v624_v52, %s934_s8 }
 0xe61   :  { %v627_v54 = vpop.permute.xlu0 %626 }
 0xe62   :  { %v629_v55 = vadd.f32 %v627_v54, %v619_v53 }
 0xe64   :  { %916 = vtanh.f32 %v629_v55 }
 0xe6a   :  { %v917_v56 = vpop.eup %916 }
 0xe6b   :  { %632 = vrot.lane.b32.xlu1 %v917_v56, %s933_s2 }
 0xedd   :  { %v633_v57 = vpop.permute.xlu1 %632 }
 0xede   :  { %v635_v59 = vmul.f32 %v633_v57, %v615_v48 }
 0xee0   :  { %v636_v60 = vadd.f32 %v635_v59, %v575_v24  ;;  %v637_v61 = vpack.c.bf16 %v635_v59, %v635_v59 }
 0xee2   :  { %639 = vrot.lane.b32.xlu2 %v637_v61, %s934_s8 }
 0xf3c   :  { %v640_v62 = vpop.permute.xlu2 %639 }
 0xf3d   :  { %855 = vmatmul.msk.bf16.vlgmr.msrb.gmra.mxu2 %vm206_vm0, %v640_v62 }
 0xfc0   :  { %v653_v1 = vpop.f32.mrf.mxu2 }
 0xfc1   :  { %v657_v2 = vadd.f32 %v653_v1, %v244_v0 }
 0xfc3   :  { %v658_v3 = vmul.f32 %v657_v2, %v1049_v31 }
 0xfc5   :  { %v856_v4 = vmul.f32 -1.442695, %v658_v3 }
 0xfc7   :  { %918 = vpow2.f32 %v856_v4 }
 0xfc8   :  { %v655_v5 = vpop.f32.mrf.mxu2 }
 0xfcd   :  { %v919_v6 = vpop.eup %918 }
 0xfce   :  { %v662_v7 = vadd.f32 1.0, %v919_v6 }
 0xfd0   :  { %920 = vrcp.f32 %v662_v7  ;;  %v674_v13 = vand.u32 2147483648, %v662_v7  ;;  %v672_v15 = vand.u32 2147483647, %v662_v7  ;;  %vm668_vm11 = vweird.f32 %v662_v7 }
 0xfd2   :  { %v675_v58 = vor.u32 1.1754944e-38, %v674_v13  ;;  %vm673_vm13 = vcmp.eq.f32.partialorder %v672_v15, 8.507059e+37 }
 0xfd6   :  { %v921_v8 = vpop.eup %920 }
 0xfd7   :  { %v664_v9 = vmul.f32 %v921_v8, %v662_v7  ;;  %vm669_vm10 = vweird.f32 %v921_v8 }
 0xfd8   :  { %vm670_vm12 = vmor %vm668_vm11, %vm669_vm10 }
 0xfd9   :  { %v665_v10 = vsub.f32 1.0, %v664_v9 }
 0xfdb   :  { %v666_v14 = vmul.f32 %v921_v8, %v665_v10 }
 0xfdd   :  { %v667_v16 = vadd.f32 %v921_v8, %v666_v14 }
 0xfdf   :  { %v671_v18 = vsel %vm670_vm12, %v921_v8, %v667_v16 }
 0xfe0   :  { %v676_v20 = vsel %vm673_vm13, %v675_v58, %v671_v18 }
 0xfe1   :  { %v678_v21 = vmul.f32 2.0, %v676_v20  ;;  %v680_v25 = vmul.f32 %v676_v20, %v629_v55 }
 0xfe3   :  { %v857_v22 = vadd.f32 -1.0, %v678_v21 }
 0xfe5   :  { %682 = vrot.lane.b32.xlu0 %v857_v22, %s933_s2 }
0x1057   :  { %v683_v23 = vpop.permute.xlu0 %682 }
0x1058   :  { %v685_v24 = vmul.f32 %v683_v23, %v676_v20 }
0x105a   :  { %687 = vrot.lane.b32.xlu1 %v685_v24, %s934_s8 }
0x10cc   :  { %v688_v26 = vpop.permute.xlu1 %687 }
0x10cd   :  { %v690_v28 = vadd.f32 %v688_v26, %v680_v25 }
0x10cf   :  { %922 = vtanh.f32 %v690_v28 }
0x10d5   :  { %v923_v29 = vpop.eup %922 }
0x10d6   :  { %693 = vrot.lane.b32.xlu2 %v923_v29, %s933_s2 }
0x1130   :  { %v694_v30 = vpop.permute.xlu2 %693 }
0x1131   :  { %v696_v11 = vmul.f32 %v694_v30, %v676_v20 }
0x1133   :  { %v697_v12 = vadd.f32 %v696_v11, %v636_v60  ;;  %v698_v32 = vpack.c.bf16 %v696_v11, %v696_v11 }
0x1135   :  { %700 = vrot.lane.b32.xlu0 %v698_v32, %s934_s8 }
0x11a7   :  { %v701_v33 = vpop.permute.xlu0 %700 }
0x11a8   :  { %858 = vmatmul.msk.bf16.vlgmr.msrb.gmra.mxu3 %vm206_vm0, %v701_v33 }
0x122b   :  { %v714_v36 = vpop.f32.mrf.mxu3 }
0x122c   :  { %v718_v37 = vadd.f32 %v714_v36, %v246_v35 }
0x122e   :  { %v719_v17 = vmul.f32 %v718_v37, %v1049_v31 }
0x1230   :  { %v859_v38 = vmul.f32 -1.442695, %v719_v17 }
0x1232   :  { %924 = vpow2.f32 %v859_v38 }
0x1233   :  { %v716_v19 = vpop.f32.mrf.mxu3 }
0x1238   :  { %v925_v39 = vpop.eup %924 }
0x1239   :  { %v723_v40 = vadd.f32 1.0, %v925_v39 }
0x123b   :  { %926 = vrcp.f32 %v723_v40  ;;  %v735_v44 = vand.u32 2147483648, %v723_v40  ;;  %v733_v46 = vand.u32 2147483647, %v723_v40  ;;  %vm729_vm15 = vweird.f32 %v723_v40 }
0x123d   :  { %v736_v27 = vor.u32 1.1754944e-38, %v735_v44  ;;  %vm734_vm2 = vcmp.eq.f32.partialorder %v733_v46, 8.507059e+37 }
0x1241   :  { %v927_v41 = vpop.eup %926 }
0x1242   :  { %v725_v42 = vmul.f32 %v927_v41, %v723_v40  ;;  %vm730_vm14 = vweird.f32 %v927_v41 }
0x1243   :  { %vm731_vm1 = vmor %vm729_vm15, %vm730_vm14 }
0x1244   :  { %v726_v43 = vsub.f32 1.0, %v725_v42 }
0x1246   :  { %v727_v45 = vmul.f32 %v927_v41, %v726_v43 }
0x1248   :  { %v728_v47 = vadd.f32 %v927_v41, %v727_v45 }
0x124a   :  { %v732_v48 = vsel %vm731_vm1, %v927_v41, %v728_v47 }
0x124b   :  { %v737_v31 = vsel %vm734_vm2, %v736_v27, %v732_v48 }
0x124c   :  { %v739_v49 = vmul.f32 2.0, %v737_v31  ;;  %v741_v53 = vmul.f32 %v737_v31, %v690_v28 }
0x124e   :  { %v860_v50 = vadd.f32 -1.0, %v739_v49 }
0x1250   :  { %743 = vrot.lane.b32.xlu1 %v860_v50, %s933_s2 }
0x12c2   :  { %v744_v51 = vpop.permute.xlu1 %743 }
0x12c3   :  { %v746_v52 = vmul.f32 %v744_v51, %v737_v31 }
0x12c5   :  { %748 = vrot.lane.b32.xlu2 %v746_v52, %s934_s8 }
0x131f   :  { %v749_v54 = vpop.permute.xlu2 %748 }
0x1320   :  { %v751_v55 = vadd.f32 %v749_v54, %v741_v53 }
0x1322   :  { %928 = vtanh.f32 %v751_v55 }
0x1328   :  { %v929_v56 = vpop.eup %928 }
0x1329   :  { %754 = vrot.lane.b32.xlu0 %v929_v56, %s933_s2 }
0x139b   :  { %v755_v57 = vpop.permute.xlu0 %754 }
0x139c   :  { %v757_v59 = vmul.f32 %v755_v57, %v737_v31 }
0x139e   :  { %v758_v60 = vadd.f32 %v757_v59, %v697_v12 }
0x13a0   :  { %v759_v61 = vmul.f32 0.125, %v758_v60 }
0x13a2   :  { %761 = vrot.lane.b32.xlu1 %v759_v61, %s934_s8 }
0x1414   :  { %v762_v62 = vpop.permute.xlu1 %761 }
0x1415   :  { %764 = vst.msk [vmem:[%s1161_s7] sm:$0xff] %vm206_vm0, %v762_v62 }

</bundles_post_ra>
